<compile_context>
chip_gen: v7x
topology: tpu7x:2x2x1
jax: 0.10.0
libtpu: 0.0.40
codegen_flags: <defaults>
</compile_context>

<pallas_src>
import jax
import jax.numpy as jnp
from jax import lax
from jax.experimental import pallas as pl
from jax.experimental.pallas import tpu as pltpu

_TILE_ROWS_MAX = 8192   # rows per grid step at large N (sweep 4096-8192)
_ROW_CHUNK = 256        # in-kernel sub-chunk: [256, dout] f32 acc = 32 vregs


def _round_up(x, m):
    return ((x + m - 1) // m) * m


def _padded_block_bytes(rows, cols, dtype):
    """VMEM footprint of a (rows, cols) block after (sublane, 128-lane) padding."""
    itemsize = jnp.dtype(dtype).itemsize
    sub = max(8, 32 // itemsize)  # 8 sublanes for f32, 16 for bf16
    return _round_up(rows, sub) * _round_up(cols, 128) * itemsize


# ----------------------------------------------------------------------------- kernel
def _make_dynamics_kernel(tile, chunk):
    n_chunks = tile // chunk

    def kernel(s_ref, c_ref, ws_ref, wc_ref, b_ref, o_ref):
        # Tiny weight / bias loads hoisted out of the row loop (blocks are grid-resident).
        ws = ws_ref[...]      # [D_state_full, dout]
        wc = wc_ref[...]      # [D_ctrl_full,  dout]
        bias = b_ref[...]     # [1, dout] f32

        def compute(r0):
            s = s_ref[pl.ds(r0, chunk), :]          # [chunk, D_state_full]
            c = c_ref[pl.ds(r0, chunk), :]          # [chunk, D_ctrl_full]
            acc = jnp.dot(s, ws, preferred_element_type=jnp.float32)
            acc = acc + jnp.dot(c, wc, preferred_element_type=jnp.float32)
            o_ref[pl.ds(r0, chunk), :] = (acc + bias).astype(o_ref.dtype)

        if n_chunks == 1:
            compute(0)
        else:
            def body(j, carry):
                compute(pl.multiple_of(j * chunk, chunk))
                return carry
            lax.fori_loop(0, n_chunks, body, 0, unroll=False)

    return kernel


# ----------------------------------------------------------------------------- wrapper
def fold_params(params, state_input_feat, ctrl_feat, d_state_full, d_ctrl_full,
                eps=1e-6):
    """Fold normalize / unnormalize / feature selection into effective W, b."""
    # Scatter-based folding requires unique feature indices (the reference
    # gather+concat would tolerate duplicates; the scatter would not).
    assert len(set(state_input_feat)) == len(state_input_feat)
    assert len(set(ctrl_feat)) == len(ctrl_feat)

    w = params["w"]                                  # [din, dout]
    b = params["b"][0]                               # [dout]
    in_mean = params["in_mean"][0]                   # [din]
    in_std = jnp.maximum(params["in_std"][0], eps)   # guard std == 0
    out_mean = params["out_mean"][0]                 # [dout]
    out_std = params["out_std"][0]                   # [dout]

    w_eff = (w / in_std[:, None]) * out_std[None, :]              # [din, dout]
    b_eff = (b - (in_mean / in_std) @ w) * out_std + out_mean     # [dout]

    din_s = len(state_input_feat)
    dout = w.shape[1]
    ws_full = jnp.zeros((d_state_full, dout), jnp.float32).at[
        jnp.array(state_input_feat)].set(w_eff[:din_s])
    wc_full = jnp.zeros((d_ctrl_full, dout), jnp.float32).at[
        jnp.array(ctrl_feat)].set(w_eff[din_s:])
    return ws_full, wc_full, b_eff.reshape(1, dout)


def dynamics_forward(states, controls, params, state_input_feat, ctrl_feat):
    """DynamicsBase.forward.

    states   : [B, T, D_state_full]  (f32 or bf16 at rest -- no wrapper cast of this stream)
    controls : [B, T, D_ctrl_full]
    returns  : [B, T, dout] f32
    """
    B, T, d_state_full = states.shape
    d_ctrl_full = controls.shape[-1]
    dout = params["w"].shape[1]
    N = B * T

    in_dtype = states.dtype
    ws, wc, b_eff = fold_params(params, state_input_feat, ctrl_feat,
                                d_state_full, d_ctrl_full)
    ws = ws.astype(in_dtype)
    wc = wc.astype(in_dtype)

    s_flat = states.reshape(N, d_state_full)                       # free reshape
    c_flat = controls.reshape(N, d_ctrl_full).astype(in_dtype)     # ctrl stream is tiny

    itemsize = jnp.dtype(in_dtype).itemsize
    sub = max(8, 32 // itemsize)  # sublane packing: 8 (f32) / 16 (bf16)

    # Row tiling: big tiles amortize the ~600-cycle/step overhead; keep >= 2 grid
    # steps when N is moderate so v7x's two TensorCores both get work.
    if N <= 512:
        tile = _round_up(N, sub)
    else:
        tile = min(_TILE_ROWS_MAX, _round_up(pl.cdiv(N, 2), 256))
    chunk = _ROW_CHUNK if (tile % _ROW_CHUNK == 0 and tile > _ROW_CHUNK) else tile
    grid = (pl.cdiv(N, tile),)   # partial last block: OOB reads feed rows that get dropped

    # Explicit VMEM budget (lane-padded, double-buffered blocks) + compiler headroom.
    vmem_limit = (
        2 * _padded_block_bytes(tile, d_state_full, in_dtype)
        + 2 * _padded_block_bytes(tile, d_ctrl_full, in_dtype)
        + 2 * _padded_block_bytes(tile, dout, jnp.float32)
        + 2 * _padded_block_bytes(d_state_full, dout, in_dtype)
        + 2 * _padded_block_bytes(d_ctrl_full, dout, in_dtype)
        + 2 * _padded_block_bytes(1, dout, jnp.float32)
        + (8 << 20)
    )

    cost = pl.CostEstimate(
        flops=2 * N * (d_state_full + d_ctrl_full) * dout,
        transcendentals=0,
        bytes_accessed=(N * (d_state_full + d_ctrl_full) * itemsize
                        + N * dout * 4
                        + (d_state_full + d_ctrl_full + 1) * dout * itemsize),
    )

    out = pl.pallas_call(
        _make_dynamics_kernel(tile, chunk),
        out_shape=jax.ShapeDtypeStruct((N, dout), jnp.float32),
        grid_spec=pltpu.PrefetchScalarGridSpec(
            num_scalar_prefetch=0,
            grid=grid,
            in_specs=[
                pl.BlockSpec((tile, d_state_full), lambda i: (i, 0)),  # states
                pl.BlockSpec((tile, d_ctrl_full), lambda i: (i, 0)),   # controls
                pl.BlockSpec((d_state_full, dout), lambda i: (0, 0)),  # W_s (folded)
                pl.BlockSpec((d_ctrl_full, dout), lambda i: (0, 0)),   # W_c (folded)
                pl.BlockSpec((1, dout), lambda i: (0, 0)),             # b (folded, f32)
            ],
            out_specs=pl.BlockSpec((tile, dout), lambda i: (i, 0)),
        ),
        compiler_params=pltpu.CompilerParams(
            dimension_semantics=("parallel",),
            vmem_limit_bytes=int(vmem_limit),
        ),
        cost_estimate=cost,
    )(s_flat, c_flat, ws, wc, b_eff)

    # [N, dout] -> [B, T, dout]: pure reshape, no HBM pass.
    return out.reshape(B, T, dout)


# ----------------------------------------------------------------------------- setup / reference
def make_params(key, din, dout):
    """Deterministic synthetic parameters (no checkpoint load)."""
    k1, k2, k3, k4 = jax.random.split(key, 4)
    return {
        "w": jax.random.normal(k1, (din, dout), jnp.float32) * 0.1,
        "b": jax.random.normal(k2, (1, dout), jnp.float32) * 0.01,
        # normalizer statistics (process_input / process_output)
        "in_mean": jax.random.normal(k3, (1, din), jnp.float32) * 0.5,
        "in_std": jnp.abs(jax.random.normal(k4, (1, din), jnp.float32)) + 1.0,
        "out_mean": jnp.zeros((1, dout), jnp.float32),
        "out_std": jnp.ones((1, dout), jnp.float32) * 2.0,
    }


def reference_forward(states, controls, params, state_input_feat, ctrl_feat,
                      eps=1e-6):
    s = states[..., jnp.array(state_input_feat)]
    c = controls[..., jnp.array(ctrl_feat)]
    x = jnp.concatenate([s, c], axis=-1).astype(jnp.float32)
    std = jnp.maximum(params["in_std"][0], eps)
    xn = (x - params["in_mean"][0]) / std
    h = xn @ params["w"] + params["b"][0]
    return h * params["out_std"][0] + params["out_mean"][0]


if __name__ == "__main__":
    # Feature index lists (stand-ins for the named feature lists in DynamicsBase.__init__).
    state_input_feat = [3, 4, 5, 12, 13, 14]   # e.g. vx, vy, vz, wx, wy, wz
    state_output_feat = [3, 4, 5, 12]          # predicted feature subset
    ctrl_feat = [0, 1]                         # steer, throttle

    D_STATE_FULL, D_CTRL_FULL = 17, 2
    din = len(state_input_feat) + len(ctrl_feat)
    dout = len(state_output_feat)

    key = jax.random.PRNGKey(0)
    k_s, k_c, k_p, k_s2, k_c2 = jax.random.split(key, 5)
    params = make_params(k_p, din, dout)

    # --- small f32 case (B=2, T=8 -> N=16): single block, tight check ---
    B, T = 2, 8
    states = jax.random.normal(k_s, (B, T, D_STATE_FULL), jnp.float32)
    controls = jax.random.normal(k_c, (B, T, D_CTRL_FULL), jnp.float32)
    ref = reference_forward(states, controls, params, state_input_feat, ctrl_feat)
    pred = jax.block_until_ready(
        dynamics_forward(states, controls, params, state_input_feat, ctrl_feat))
    assert pred.shape == (B, T, dout)
    assert jnp.allclose(pred, ref, atol=1e-4, rtol=1e-4), "f32 small-N mismatch"

    # --- larger f32 case (B=4, T=200 -> N=800): 2 grid steps, partial last block,
    #     in-kernel 256-row chunk loop ---
    B2, T2 = 4, 200
    states2 = jax.random.normal(k_s2, (B2, T2, D_STATE_FULL), jnp.float32)
    controls2 = jax.random.normal(k_c2, (B2, T2, D_CTRL_FULL), jnp.float32)
    ref2 = reference_forward(states2, controls2, params, state_input_feat, ctrl_feat)
    pred2 = jax.block_until_ready(
        dynamics_forward(states2, controls2, params, state_input_feat, ctrl_feat))
    assert pred2.shape == (B2, T2, dout)
    assert jnp.allclose(pred2, ref2, atol=1e-4, rtol=1e-4), "f32 multi-block mismatch"

    # --- bf16-at-rest inputs (cast happens upstream, not in the wrapper): loose check ---
    states_bf = states2.astype(jnp.bfloat16)
    controls_bf = controls2.astype(jnp.bfloat16)
    pred_bf = jax.block_until_ready(
        dynamics_forward(states_bf, controls_bf, params, state_input_feat, ctrl_feat))
    assert jnp.allclose(pred_bf, ref2, atol=8e-2, rtol=8e-2), "bf16 mismatch"

    print("KERNEL_OK")
</pallas_src>

<mosaic_0001>
module attributes {stable_mosaic.version = 11 : i64} {
  func.func @kernel(%arg0: i32, %arg1: memref<16x17xf32, #tpu.memory_space<vmem>>, %arg2: memref<16x2xf32, #tpu.memory_space<vmem>>, %arg3: memref<17x4xf32, #tpu.memory_space<vmem>>, %arg4: memref<2x4xf32, #tpu.memory_space<vmem>>, %arg5: memref<1x4xf32, #tpu.memory_space<vmem>>, %arg6: memref<16x4xf32, #tpu.memory_space<vmem>>) attributes {dimension_semantics = [#tpu.dimension_semantics<parallel>], iteration_bounds = array<i64: 1>, scalar_prefetch = 0 : i64, scratch_operands = 0 : i64, tpu.core_type = #tpu.core_type<tc>, window_params = [{transform_indices = @transform_0, window_bounds = array<i64: 16, 17>}, {transform_indices = @transform_1, window_bounds = array<i64: 16, 2>}, {pipeline_mode = #tpu.pipeline_mode<synchronous>, transform_indices = @transform_2, window_bounds = array<i64: 17, 4>}, {pipeline_mode = #tpu.pipeline_mode<synchronous>, transform_indices = @transform_3, window_bounds = array<i64: 2, 4>}, {pipeline_mode = #tpu.pipeline_mode<synchronous>, transform_indices = @transform_4, window_bounds = array<i64: 1, 4>}, {transform_indices = @transform_5, window_bounds = array<i64: 16, 4>}]} {
    %c0 = arith.constant 0 : index
    %c0_0 = arith.constant 0 : index
    %0 = vector.load %arg3[%c0, %c0_0] : memref<17x4xf32, #tpu.memory_space<vmem>>, vector<17x4xf32>
    %c0_1 = arith.constant 0 : index
    %c0_2 = arith.constant 0 : index
    %1 = vector.load %arg4[%c0_1, %c0_2] : memref<2x4xf32, #tpu.memory_space<vmem>>, vector<2x4xf32>
    %c0_3 = arith.constant 0 : index
    %c0_4 = arith.constant 0 : index
    %2 = vector.load %arg5[%c0_3, %c0_4] : memref<1x4xf32, #tpu.memory_space<vmem>>, vector<1x4xf32>
    %c0_5 = arith.constant 0 : index
    %c0_6 = arith.constant 0 : index
    %3 = vector.load %arg1[%c0_5, %c0_6] : memref<16x17xf32, #tpu.memory_space<vmem>>, vector<16x17xf32>
    %c0_7 = arith.constant 0 : index
    %c0_8 = arith.constant 0 : index
    %4 = vector.load %arg2[%c0_7, %c0_8] : memref<16x2xf32, #tpu.memory_space<vmem>>, vector<16x2xf32>
    %cst = arith.constant dense<0.000000e+00> : vector<16x4xf32>
    %5 = tpu.matmul %3, %0, %cst {dimension_numbers = #tpu.dot_dimension_numbers<[1], [0], [0], [1], [0, 0, 1, 1], [], []>} : vector<16x17xf32>, vector<17x4xf32>, vector<16x4xf32> -> vector<16x4xf32>
    %cst_9 = arith.constant dense<0.000000e+00> : vector<16x4xf32>
    %6 = tpu.matmul %4, %1, %cst_9 {dimension_numbers = #tpu.dot_dimension_numbers<[1], [0], [0], [1], [0, 0, 1, 1], [], []>} : vector<16x2xf32>, vector<2x4xf32>, vector<16x4xf32> -> vector<16x4xf32>
    %7 = arith.addf %5, %6 : vector<16x4xf32>
    %8 = vector.broadcast %2 : vector<1x4xf32> to vector<16x4xf32>
    %9 = arith.addf %7, %8 : vector<16x4xf32>
    %c0_10 = arith.constant 0 : index
    %c0_11 = arith.constant 0 : index
    %10 = vector.load %arg6[%c0_10, %c0_11] : memref<16x4xf32, #tpu.memory_space<vmem>>, vector<16x4xf32>
    tpu.vector_store %arg6[%c0_10, %c0_11], %9 {strides = array<i32>} : memref<16x4xf32, #tpu.memory_space<vmem>>, vector<16x4xf32>,
    return
  }
  func.func @transform_0(%arg0: i32) -> (i32, i32) {
    %c0_i32 = arith.constant 0 : i32
    %c0_i32_0 = arith.constant 0 : i32
    return %arg0, %c0_i32 : i32, i32
  }
  func.func @transform_1(%arg0: i32) -> (i32, i32) {
    %c0_i32 = arith.constant 0 : i32
    %c0_i32_0 = arith.constant 0 : i32
    return %arg0, %c0_i32 : i32, i32
  }
  func.func @transform_2(%arg0: i32) -> (i32, i32) {
    %c0_i32 = arith.constant 0 : i32
    %c0_i32_0 = arith.constant 0 : i32
    %c0_i32_1 = arith.constant 0 : i32
    return %c0_i32, %c0_i32_0 : i32, i32
  }
  func.func @transform_3(%arg0: i32) -> (i32, i32) {
    %c0_i32 = arith.constant 0 : i32
    %c0_i32_0 = arith.constant 0 : i32
    %c0_i32_1 = arith.constant 0 : i32
    return %c0_i32, %c0_i32_0 : i32, i32
  }
  func.func @transform_4(%arg0: i32) -> (i32, i32) {
    %c0_i32 = arith.constant 0 : i32
    %c0_i32_0 = arith.constant 0 : i32
    %c0_i32_1 = arith.constant 0 : i32
    return %c0_i32, %c0_i32_0 : i32, i32
  }
  func.func @transform_5(%arg0: i32) -> (i32, i32) {
    %c0_i32 = arith.constant 0 : i32
    %c0_i32_0 = arith.constant 0 : i32
    return %arg0, %c0_i32 : i32, i32
  }
}

</mosaic_0001>

<bundles_post_ra>
// kernel: tpu_custom_call.1
= control target key start
LH: loop header
LB: loop body
LE: loop exit
PB: predicated region body
PF: predicated region fallthrough
CT: control target
= control target key end

     0   :  { %vm36_vm0 = vcmask 1041408   ;;  %vm29_vm1 = vcmask 15360   ;;  %vm115_vm2 = vcmask 138240   ;;  %vm122_vm3 = vcmask 1040384   ;;  %s316_s2 = inlined_call_operand.vmem [shape: f32[17,4], index: 2, kind: input, shape index: {}]   ;;  %s317_s3 = inlined_call_operand.vmem [shape: f32[2,4], index: 3, kind: input, shape index: {}]   ;;  %s318_s1 = inlined_call_operand.vmem [shape: f32[16,2], index: 1, kind: input, shape index: {}]   ;;  %s319_s0 = inlined_call_operand.vmem [shape: f32[16,17], index: 0, kind: input, shape index: {}]   ;;  %s320_s4 = inlined_call_operand.vmem [shape: f32[1,4], index: 4, kind: input, shape index: {}]   ;;  %s321_s5 = inlined_call_operand.vmem [shape: f32[16,4], index: 5, kind: output, shape index: {}]  }
   0x1   :  { %v20_v0 = vld [vmem:[%s316_s2] sm:$0xff]  ;;  %v21_v1 = vld [vmem:[%s316_s2 + $0x8] sm:$0xff]  ;;  %v22_v6 = vld [vmem:[%s316_s2 + $0x10] sm:$0x1]  ;;  %vm209_vm4 = vcmask 31744  }
   0x2   :  { %v23_v2 = vld [vmem:[%s317_s3] sm:$0x3]  ;;  %v245_v3 = vpack.c.bf16 %v21_v1, %v20_v0  ;;  %v28_v5 = vld [vmem:[%s318_s1 + $0x8] sm:$0xff] }
   0x3   :  { %231 = vmatprep.subr.msk.mxu1 %vm36_vm0, %v23_v2  ;;  %v27_v4 = vld [vmem:[%s318_s1] sm:$0xff]  ;;  %v26_v8 = vld [vmem:[%s319_s0 + $0x8] sm:$0xff] }
   0x4   :  { %232 = vmatpush3.msk.msra.mxu1 %vm36_vm0, %v23_v2  ;;  %233 = vmatprep.mubr.msk.f32.mxu1 %vm29_vm1, %v27_v4  ;;  %v25_v7 = vld [vmem:[%s319_s0] sm:$0xff] }
   0x5   :  { %246 = vmatprep.subr.bf16.mxu0 %v245_v3  ;;  %234 = vmatmul.mubr.msk.f32.vlgmr.msra.gmra.mrb[0].mxu1 %vm29_vm1, %v28_v5  ;;  %v222_v11 = vld [vmem:[%s320_s4] ss:$0 sm:$0xff] }
   0x6   :  { %248 = vmatpush3.bf16.msra.mxu0 %v245_v3  ;;  %242 = vmatprep.mubr.msk.f32.mxu0 %vm115_vm2, %v25_v7 }
   0x7   :  { %240 = vmatprep.subr.msk.mxu0 %vm122_vm3, %v22_v6 }
   0xa   :  { %241 = vmatpush3.msk.msra.mxu0 %vm122_vm3, %v22_v6 }
   0xb   :  { %243 = vmatmul.mubr.msk.f32.vlgmr.msra.gmra.mrb[0].mxu0 %vm115_vm2, %v26_v8 }
  0xd8   :  { %v235_v9 = vpop.f32.mrb[0].mxu1 }
  0xd9   :  { %v106_v10 = vpop.f32.mrb[1].mxu1 }
  0xde   :  { %v244_v12 = vpop.f32.mrb[0].mxu0 }
  0xdf   :  { %v198_v13 = vadd.f32 %v244_v12, %v235_v9  ;;  %v192_v14 = vpop.f32.mrb[1].mxu0 }
  0xe0   :  { %v193_v15 = vadd.f32 %v192_v14, %v106_v10 }
  0xe1   :  { %v208_v16 = vadd.f32 %v222_v11, %v198_v13 }
  0xe2   :  { %v207_v17 = vadd.f32 %v222_v11, %v193_v15 }
  0xe3   :  { %211 = vst.msk [vmem:[%s321_s5 + $0x8] sm:$0xff] %vm209_vm4, %v208_v16 }
  0xe4   :  { %210 = vst.msk [vmem:[%s321_s5] sm:$0xff] %vm209_vm4, %v207_v17 }

</bundles_post_ra>
